<compile_context>
chip_gen: v7x
topology: tpu7x:2x2x1
jax: 0.10.0
libtpu: 0.0.40
codegen_flags: <defaults>
</compile_context>

<pallas_src>
import functools
import math

import jax
import jax.numpy as jnp
from jax import lax
from jax.experimental import pallas as pl
from jax.experimental.pallas import tpu as pltpu


def _conv_layer_kernel(x_ref, w_ref, add_ref, o_ref, *, alpha):
    """One grid step: one im2row matmul + fused bias/noise/lrelu epilogue.

    x_ref  : (Mt, Kc)    bf16 im2row patches (dy taps concatenated on lanes, zero padded)
    w_ref  : (Kc, WCo)   bf16 banded weights (dx taps, width pad and act_gain folded in)
    add_ref: (Mt, WCo)   f32  act_gain * (noise + bias), output lane layout
    o_ref  : (Mt, WCo)   output tile (lane dense)
    """
    acc = add_ref[...] + jnp.dot(x_ref[...], w_ref[...],
                                 preferred_element_type=jnp.float32)
    o_ref[...] = jnp.where(acc >= 0.0, acc, alpha * acc).astype(o_ref.dtype)


def _build_banded_weights(weight, scale, W, pad):
    """Fold the dx taps and horizontal zero padding into K banded matrices.

    Returns (K, W*C_in, W*C_out) with
      M[dy][wi*C_in + ci, wo*C_out + co] = weight[co, ci, dy, dx] * scale
    for wi == wo + dx - pad (and 0 elsewhere, which implements width padding).
    """
    C_out, C_in, K, _ = weight.shape
    taps = (jnp.transpose(weight, (2, 3, 1, 0)) * scale).astype(jnp.float32)  # (K,K,Ci,Co)
    shifts = jnp.stack([jnp.eye(W, dtype=jnp.float32, k=pad - dx) for dx in range(K)])
    mats = jnp.einsum('yxio,xab->yaibo', taps, shifts)                         # (K,W,Ci,W,Co)
    return mats.reshape(K, W * C_in, W * C_out)


def _vmem_capacity_bytes():
    """Generation-aware VMEM capacity; conservative fallback = v7x per-TC (64 MiB)."""
    try:
        info = pltpu.get_tpu_info()
        cap = getattr(info, "vmem_capacity_bytes", None)
        if cap:
            return int(cap)
    except Exception:
        pass
    return 64 << 20


def _pick_row_block(M, Kc, WCo, out_bytes, compute_bytes, vmem_cap):
    """Pick the per-step row tile Mt (divides M, multiple of 8, fits the VMEM budget)."""
    # Headroom: double-buffered resident weight block + compiler scratch.
    w_bytes = 2 * Kc * WCo * compute_bytes
    budget = max(int(vmem_cap * 0.6) - w_bytes, 1 << 20)
    per_row = (2 * Kc * compute_bytes      # x block, double buffered
               + 2 * WCo * 4               # f32 addend, double buffered
               + 2 * WCo * out_bytes)      # output, double buffered
    rows = max(8, min(M, budget // max(per_row, 1)))
    mt = None
    for cand in range(min(rows, M), 7, -1):
        if M % cand == 0 and cand % 8 == 0:
            mt = cand
            break
    if mt is None:
        mt = M  # full-extent block is always legal
    # Give the second v7x TensorCore work (and enable pipelining) only when the
    # per-step matmul clearly exceeds the ~0.35us fixed grid-step overhead.
    if M // mt == 1 and M % 16 == 0 and 2 * mt * Kc * WCo > (128 << 20):
        mt = M // 2
    return mt


def conv_layer_forward(x_nchw, weight, bias, noise_const, noise_strength,
                       noise_mode="const", gain=1.0, noise_key=None,
                       compute_dtype=jnp.bfloat16):
    """Forward pass of ConvLayer (up=1, use_noise=True, activation='lrelu').

    Wrap calls in jax.jit (see __main__): the banded-weight build, im2row and addend
    prep are then compiled once and cached instead of re-traced every forward.
    """
    assert noise_mode in ("random", "const", "none")
    B, C_in, H, W = x_nchw.shape
    C_out, C_in_w, K, K2 = weight.shape
    assert C_in_w == C_in and K == K2
    pad = K // 2
    WCi, WCo = W * C_in, W * C_out
    Kraw = K * WCi
    Kc = ((Kraw + 127) // 128) * 128        # lane-dense contraction (full MXU depth)
    M = B * H

    # styles are the constant 1/sqrt(C_in*K*K); demodulate=False -> pure weight scale.
    # act_gain (= sqrt(2)*def_gain * gain, > 0) is folded into weights and addend so the
    # kernel epilogue is just the leaky-relu select.
    scale = 1.0 / math.sqrt(C_in * K * K)
    act_gain = math.sqrt(2.0) * float(gain)

    # Noise (added after conv, broadcast over channels).
    if noise_mode == "const":
        noise = jnp.broadcast_to(noise_const, (B, H, W)).astype(jnp.float32) * noise_strength
    elif noise_mode == "random":
        if noise_key is None:
            raise ValueError("noise_mode='random' requires an explicit noise_key "
                             "(otherwise the noise would repeat on every call).")
        noise = jax.random.normal(noise_key, (B, H, W), jnp.float32) * noise_strength
    else:
        noise = jnp.zeros((B, H, W), jnp.float32)

    # Activations: NCHW -> (B, H+2*pad, W*C_in) with height zero pad, channels on lanes,
    # then im2row: K height-shifted copies concatenated on lanes, padded to Kc.
    x_lanes = jnp.transpose(x_nchw, (0, 2, 3, 1)).reshape(B, H, WCi)
    x_padh = jnp.pad(x_lanes, ((0, 0), (pad, pad), (0, 0)))
    x_patches = jnp.concatenate([x_padh[:, dy:dy + H, :] for dy in range(K)], axis=-1)
    x_patches = x_patches.reshape(M, Kraw)
    if Kc > Kraw:
        x_patches = jnp.pad(x_patches, ((0, 0), (0, Kc - Kraw)))
    x_patches = x_patches.astype(compute_dtype)

    # Weights: K banded (WCi, WCo) matrices stacked into one (Kc, WCo) matrix; dx taps,
    # width padding and act_gain all folded in.
    w_big = _build_banded_weights(weight, scale * act_gain, W, pad).reshape(Kraw, WCo)
    if Kc > Kraw:
        w_big = jnp.pad(w_big, ((0, Kc - Kraw), (0, 0)))
    w_big = w_big.astype(compute_dtype)

    # Fused (noise + bias) addend in the output lane layout, pre-scaled by act_gain.
    addend = (act_gain * (noise[:, :, :, None].astype(jnp.float32)
                          + bias[None, None, None, :].astype(jnp.float32))
              ).reshape(M, WCo)

    compute_bytes = jnp.dtype(compute_dtype).itemsize
    out_bytes = jnp.dtype(x_nchw.dtype).itemsize
    vmem_cap = _vmem_capacity_bytes()
    Mt = _pick_row_block(M, Kc, WCo, out_bytes, compute_bytes, vmem_cap)
    nb = M // Mt

    est = (2 * Mt * Kc * compute_bytes + 2 * Mt * WCo * 4
           + 2 * Mt * WCo * out_bytes + 2 * Kc * WCo * compute_bytes)
    vmem_limit = int(min(int(vmem_cap * 0.9), max(2 * est, 32 << 20)))

    kernel = functools.partial(_conv_layer_kernel, alpha=0.2)

    out_flat = pl.pallas_call(
        kernel,
        out_shape=jax.ShapeDtypeStruct((M, WCo), x_nchw.dtype),
        grid_spec=pltpu.PrefetchScalarGridSpec(
            num_scalar_prefetch=0,
            grid=(nb,),
            in_specs=[
                pl.BlockSpec((Mt, Kc), lambda i: (i, 0)),
                pl.BlockSpec((Kc, WCo), lambda i: (0, 0)),
                pl.BlockSpec((Mt, WCo), lambda i: (i, 0)),
            ],
            out_specs=pl.BlockSpec((Mt, WCo), lambda i: (i, 0)),
        ),
        compiler_params=pltpu.CompilerParams(
            dimension_semantics=("parallel",),
            vmem_limit_bytes=vmem_limit),
    )(x_patches, w_big, addend)

    # (B*H, W*C_out) -> NCHW at the API boundary.
    return jnp.transpose(out_flat.reshape(B, H, W, C_out), (0, 3, 1, 2))


def _reference(x_nchw, weight, bias, noise_const, noise_strength, gain=1.0,
               compute_dtype=jnp.bfloat16):
    """Plain-JAX reference (mirrors modulated_conv2d + bias_act).

    Mirrors the kernel's operand quantization (compute_dtype operands, f32 accumulation,
    act_gain folded into the weights) so the comparison isolates kernel/layout bugs.
    """
    B, C_in, H, W = x_nchw.shape
    C_out, _, K, _ = weight.shape
    scale = 1.0 / math.sqrt(C_in * K * K)
    act_gain = math.sqrt(2.0) * float(gain)
    xq = x_nchw.astype(compute_dtype).astype(jnp.float32)
    wq = (weight * (scale * act_gain)).astype(compute_dtype).astype(jnp.float32)
    y = lax.conv_general_dilated(
        xq, wq, window_strides=(1, 1),
        padding=((K // 2, K // 2), (K // 2, K // 2)),
        dimension_numbers=("NCHW", "OIHW", "NCHW"))
    y = y + act_gain * (noise_const * noise_strength)[None, None, :, :]
    y = y + act_gain * bias[None, :, None, None]
    y = jnp.where(y >= 0, y, 0.2 * y)
    return y.astype(x_nchw.dtype)


if __name__ == "__main__":
    # Module config: in_channels=4, out_channels=8, resolution=16, kernel_size=3, up=1
    B, C_in, C_out, RES, K = 2, 4, 8, 16, 3

    key = jax.random.PRNGKey(0)
    kx, kw, kb, kn = jax.random.split(key, 4)
    x = jax.random.normal(kx, (B, C_in, RES, RES), jnp.float32)
    weight = jax.random.normal(kw, (C_out, C_in, K, K), jnp.float32)    # randn per __init__
    bias = 0.1 * jax.random.normal(kb, (C_out,), jnp.float32)           # shape per __init__
    noise_const = jax.random.normal(kn, (RES, RES), jnp.float32)        # randn per __init__
    noise_strength = jnp.float32(0.1)                                   # scalar param

    # jit the whole forward: the wrapper-side prep (banded weights, im2row, addend) is
    # compiled and cached once instead of being rebuilt every call.
    fwd = jax.jit(functools.partial(conv_layer_forward, noise_mode="const", gain=1.0))
    out = fwd(x, weight, bias, noise_const, noise_strength)
    out = jax.block_until_ready(out)

    ref = _reference(x, weight, bias, noise_const, noise_strength, gain=1.0,
                     compute_dtype=jnp.bfloat16)
    assert out.shape == (B, C_out, RES, RES)
    assert jnp.allclose(out, ref, atol=1e-3, rtol=1e-3), "mismatch vs reference"

    print("KERNEL_OK")
</pallas_src>

<mosaic_0001>
module attributes {stable_mosaic.version = 11 : i64} {
  func.func @_conv_layer_kernel(%arg0: i32, %arg1: memref<32x256xbf16, #tpu.memory_space<vmem>>, %arg2: memref<256x128xbf16, #tpu.memory_space<vmem>>, %arg3: memref<32x128xf32, #tpu.memory_space<vmem>>, %arg4: memref<32x128xf32, #tpu.memory_space<vmem>>) attributes {dimension_semantics = [#tpu.dimension_semantics<parallel>], iteration_bounds = array<i64: 1>, scalar_prefetch = 0 : i64, scratch_operands = 0 : i64, tpu.core_type = #tpu.core_type<tc>, window_params = [{transform_indices = @transform_0, window_bounds = array<i64: 32, 256>}, {pipeline_mode = #tpu.pipeline_mode<synchronous>, transform_indices = @transform_1, window_bounds = array<i64: 256, 128>}, {transform_indices = @transform_2, window_bounds = array<i64: 32, 128>}, {transform_indices = @transform_3, window_bounds = array<i64: 32, 128>}]} {
    %c0 = arith.constant 0 : index
    %c0_0 = arith.constant 0 : index
    %0 = vector.load %arg3[%c0, %c0_0] : memref<32x128xf32, #tpu.memory_space<vmem>>, vector<32x128xf32>
    %c0_1 = arith.constant 0 : index
    %c0_2 = arith.constant 0 : index
    %1 = vector.load %arg1[%c0_1, %c0_2] : memref<32x256xbf16, #tpu.memory_space<vmem>>, vector<32x256xbf16>
    %c0_3 = arith.constant 0 : index
    %c0_4 = arith.constant 0 : index
    %2 = vector.load %arg2[%c0_3, %c0_4] : memref<256x128xbf16, #tpu.memory_space<vmem>>, vector<256x128xbf16>
    %cst = arith.constant dense<0.000000e+00> : vector<32x128xf32>
    %3 = tpu.matmul %1, %2, %cst {dimension_numbers = #tpu.dot_dimension_numbers<[1], [0], [0], [1], [0, 0, 1, 1], [], []>} : vector<32x256xbf16>, vector<256x128xbf16>, vector<32x128xf32> -> vector<32x128xf32>
    %4 = arith.addf %0, %3 : vector<32x128xf32>
    %cst_5 = arith.constant 0.000000e+00 : f32
    %5 = vector.broadcast %cst_5 : f32 to vector<32x128xf32>
    %6 = arith.cmpf oge, %4, %5 : vector<32x128xf32>
    %cst_6 = arith.constant 2.000000e-01 : f32
    %7 = vector.broadcast %cst_6 : f32 to vector<32x128xf32>
    %8 = arith.mulf %7, %4 : vector<32x128xf32>
    %9 = arith.select %6, %4, %8 : vector<32x128xi1>, vector<32x128xf32>
    %c0_7 = arith.constant 0 : index
    %c0_8 = arith.constant 0 : index
    %10 = vector.load %arg4[%c0_7, %c0_8] : memref<32x128xf32, #tpu.memory_space<vmem>>, vector<32x128xf32>
    tpu.vector_store %arg4[%c0_7, %c0_8], %9 {strides = array<i32>} : memref<32x128xf32, #tpu.memory_space<vmem>>, vector<32x128xf32>,
    return
  }
  func.func @transform_0(%arg0: i32) -> (i32, i32) {
    %c0_i32 = arith.constant 0 : i32
    %c0_i32_0 = arith.constant 0 : i32
    return %arg0, %c0_i32 : i32, i32
  }
  func.func @transform_1(%arg0: i32) -> (i32, i32) {
    %c0_i32 = arith.constant 0 : i32
    %c0_i32_0 = arith.constant 0 : i32
    %c0_i32_1 = arith.constant 0 : i32
    return %c0_i32, %c0_i32_0 : i32, i32
  }
  func.func @transform_2(%arg0: i32) -> (i32, i32) {
    %c0_i32 = arith.constant 0 : i32
    %c0_i32_0 = arith.constant 0 : i32
    return %arg0, %c0_i32 : i32, i32
  }
  func.func @transform_3(%arg0: i32) -> (i32, i32) {
    %c0_i32 = arith.constant 0 : i32
    %c0_i32_0 = arith.constant 0 : i32
    return %arg0, %c0_i32 : i32, i32
  }
}

</mosaic_0001>

<bundles_post_ra>
// kernel: conv_layer_forward.1
= control target key start
LH: loop header
LB: loop body
LE: loop exit
PB: predicated region body
PF: predicated region fallthrough
CT: control target
= control target key end

     0   :  { %s434_s1 = inlined_call_operand.vmem [shape: bf16[256,128], index: 1, kind: input, shape index: {}]   ;;  %s435_s0 = inlined_call_operand.vmem [shape: bf16[32,256], index: 0, kind: input, shape index: {}]   ;;  %s436_s2 = inlined_call_operand.vmem [shape: f32[32,128], index: 2, kind: input, shape index: {}]   ;;  %s437_s3 = inlined_call_operand.vmem [shape: f32[32,128], index: 3, kind: output, shape index: {}]  }
   0x1   :  { %v308_v0 = vld [vmem:[%s434_s1 + $0x40] sm:$0xff]   ;;  %v310_v2 = vld [vmem:[%s434_s1 + $0x48] sm:$0xff]   ;;  %v312_v4 = vld [vmem:[%s434_s1 + $0x50] sm:$0xff]  }
   0x2   :  { %v309_v1 = vld [vmem:[%s434_s1] sm:$0xff]   ;;  %264 = vmatprep.subr.bf16.mxu0 %v308_v0  ;;  %292 = vmatprep.subr.bf16.mxu1 %v308_v0  ;;  %v311_v3 = vld [vmem:[%s434_s1 + $0x8] sm:$0xff]   ;;  %v313_v5 = vld [vmem:[%s434_s1 + $0x10] sm:$0xff]  }
   0x3   :  { %265 = vmatpush3.bf16.msra.mxu0 %v309_v1  ;;  %300 = vmatpush3.bf16.msra.mxu1 %v309_v1  ;;  %v314_v6 = vld [vmem:[%s434_s1 + $0x58] sm:$0xff]   ;;  %v316_v8 = vld [vmem:[%s434_s1 + $0x60] sm:$0xff]   ;;  %v318_v10 = vld [vmem:[%s434_s1 + $0x68] sm:$0xff]  }
   0x4   :  { %266 = vmatprep.subr.bf16.mxu0 %v310_v2  ;;  %293 = vmatprep.subr.bf16.mxu1 %v310_v2  ;;  %v315_v7 = vld [vmem:[%s434_s1 + $0x18] sm:$0xff]   ;;  %v317_v9 = vld [vmem:[%s434_s1 + $0x20] sm:$0xff]   ;;  %v319_v13 = vld [vmem:[%s434_s1 + $0x28] sm:$0xff]  }
   0x5   :  { %v326_v11 = vld [vmem:[%s435_s0 + $0x4] ss:$8 sps:$4 sm:$0xff]   ;;  %v329_v12 = vld [vmem:[%s435_s0 + $0x14] ss:$8 sps:$4 sm:$0xff]   ;;  %v324_v18 = vld [vmem:[%s435_s0] ss:$8 sps:$4 sm:$0xff]  }
   0x6   :  { %v320_v14 = vld [vmem:[%s434_s1 + $0x70] sm:$0xff]   ;;  %203 = vmatprep.mubr.bf16.mxu0 %v326_v11  ;;  %211 = vmatprep.mubr.bf16.mxu1 %v329_v12  ;;  %v322_v16 = vld [vmem:[%s434_s1 + $0x78] sm:$0xff]   ;;  %v15_v22 = vld [vmem:[%s436_s2] sm:$0xff] }
   0x7   :  { %267 = vmatpush3.bf16.msra.mxu0 %v311_v3  ;;  %301 = vmatpush3.bf16.msra.mxu1 %v311_v3  ;;  %v321_v15 = vld [vmem:[%s434_s1 + $0x30] sm:$0xff]   ;;  %v323_v17 = vld [vmem:[%s434_s1 + $0x38] sm:$0xff]   ;;  %v16_v34 = vld [vmem:[%s436_s2 + $0x8] sm:$0xff] }
   0x8   :  { %268 = vmatprep.subr.bf16.mxu0 %v312_v4  ;;  %294 = vmatprep.subr.bf16.mxu1 %v312_v4  ;;  %v327_v19 = vld [vmem:[%s435_s0 + $0x10] ss:$8 sps:$4 sm:$0xff]  }
   0x9   :  { %v17_v24 = vld [vmem:[%s436_s2 + $0x10] sm:$0xff]  ;;  %v18_v36 = vld [vmem:[%s436_s2 + $0x18] sm:$0xff] }
   0xb   :  { %269 = vmatpush3.bf16.msra.mxu0 %v313_v5  ;;  %302 = vmatpush3.bf16.msra.mxu1 %v313_v5 }
   0xc   :  { %270 = vmatprep.subr.bf16.mxu0 %v314_v6  ;;  %295 = vmatprep.subr.bf16.mxu1 %v314_v6 }
   0xf   :  { %271 = vmatpush3.bf16.msra.mxu0 %v315_v7  ;;  %303 = vmatpush3.bf16.msra.mxu1 %v315_v7 }
  0x10   :  { %272 = vmatprep.subr.bf16.mxu0 %v316_v8  ;;  %296 = vmatprep.subr.bf16.mxu1 %v316_v8 }
  0x13   :  { %273 = vmatpush3.bf16.msra.mxu0 %v317_v9  ;;  %304 = vmatpush3.bf16.msra.mxu1 %v317_v9 }
  0x14   :  { %274 = vmatprep.subr.bf16.mxu0 %v318_v10  ;;  %297 = vmatprep.subr.bf16.mxu1 %v318_v10 }
  0x17   :  { %275 = vmatpush3.bf16.msra.mxu0 %v319_v13  ;;  %305 = vmatpush3.bf16.msra.mxu1 %v319_v13 }
  0x18   :  { %276 = vmatprep.subr.bf16.mxu0 %v320_v14  ;;  %298 = vmatprep.subr.bf16.mxu1 %v320_v14 }
  0x1b   :  { %277 = vmatpush3.bf16.msra.mxu0 %v321_v15  ;;  %306 = vmatpush3.bf16.msra.mxu1 %v321_v15 }
  0x1c   :  { %278 = vmatprep.subr.bf16.mxu0 %v322_v16  ;;  %299 = vmatprep.subr.bf16.mxu1 %v322_v16 }
  0x1f   :  { %279 = vmatpush3.bf16.msra.mxu0 %v323_v17  ;;  %307 = vmatpush3.bf16.msra.mxu1 %v323_v17 }
  0x22   :  { %204 = vmatmul.mubr.bf16.vlgmr.msra.gmra.mrb[0].mxu0 %v324_v18  ;;  %212 = vmatmul.mubr.bf16.vlgmr.msra.gmra.mrb[0].mxu1 %v327_v19 }
  0xf5   :  { %v280_v20 = vpop.f32.mrb[0].mxu0  ;;  %v286_v21 = vpop.f32.mrb[0].mxu1 }
  0xf6   :  { %v281_v23 = vpop.f32.mrb[1].mxu0  ;;  %v287_v25 = vpop.f32.mrb[1].mxu1 }
  0xf7   :  { %v282_v26 = vadd.f32 %v281_v23, %v280_v20  ;;  %v288_v27 = vadd.f32 %v287_v25, %v286_v21  ;;  %v283_v28 = vpop.f32.mrb[2].mxu0  ;;  %v289_v29 = vpop.f32.mrb[2].mxu1 }
  0xf8   :  { %v284_v30 = vpop.f32.mrb[3].mxu0  ;;  %v290_v31 = vpop.f32.mrb[3].mxu1 }
  0xf9   :  { %v220_v32 = vadd.f32 %v282_v26, %v15_v22  ;;  %v222_v33 = vadd.f32 %v288_v27, %v17_v24  ;;  %v285_v35 = vadd.f32 %v284_v30, %v283_v28  ;;  %v291_v37 = vadd.f32 %v290_v31, %v289_v29 }
  0xfb   :  { %vm224_vm0 = vcmp.ge.f32.partialorder %v220_v32, 0.0  ;;  %v228_v38 = vmul.f32 0.2, %v220_v32  ;;  %vm226_vm1 = vcmp.ge.f32.partialorder %v222_v33, 0.0  ;;  %v230_v39 = vmul.f32 0.2, %v222_v33 }
  0xfc   :  { %v221_v40 = vadd.f32 %v285_v35, %v16_v34  ;;  %v223_v41 = vadd.f32 %v291_v37, %v18_v36 }
  0xfd   :  { %v232_v42 = vsel %vm224_vm0, %v220_v32, %v228_v38  ;;  %v234_v43 = vsel %vm226_vm1, %v222_v33, %v230_v39 }
  0xfe   :  { %236 = vst [vmem:[%s437_s3] sm:$0xff] %v232_v42  ;;  %238 = vst [vmem:[%s437_s3 + $0x10] sm:$0xff] %v234_v43  ;;  %vm225_vm2 = vcmp.ge.f32.partialorder %v221_v40, 0.0  ;;  %v229_v44 = vmul.f32 0.2, %v221_v40  ;;  %vm227_vm3 = vcmp.ge.f32.partialorder %v223_v41, 0.0 }
  0xff   :  { %v231_v45 = vmul.f32 0.2, %v223_v41 }
 0x100   :  { %v233_v46 = vsel %vm225_vm2, %v221_v40, %v229_v44 }
 0x101   :  { %v235_v47 = vsel %vm227_vm3, %v223_v41, %v231_v45  ;;  %237 = vst [vmem:[%s437_s3 + $0x8] sm:$0xff] %v233_v46 }
 0x102   :  { %239 = vst [vmem:[%s437_s3 + $0x18] sm:$0xff] %v235_v47 }

</bundles_post_ra>
